<compile_context>
chip_gen: v7x
topology: tpu7x:2x2x1
jax: 0.10.0
libtpu: 0.0.40
codegen_flags: <defaults>
</compile_context>

<pallas_src>
import jax
import jax.numpy as jnp
import numpy as np
from jax.experimental import pallas as pl
from jax.experimental.pallas import tpu as pltpu

SEQ_CHUNK = 8     # sequence positions folded per compare step
TV = 256          # vocab tile (K-reduction axis); sized for v7x's 64 MiB VMEM
LANE = 128        # lane width / MXU-friendly padding


def _round_up(x, m):
    return ((x + m - 1) // m) * m


def bow_kernel(data_ref, length_ref, w_ref, b_ref, out_ref, acc_ref):
    """One (batch-tile i, vocab-tile k) grid step.

    data_ref   : (n_chunks, TB, SEQ_CHUNK) int32  token ids, chunk-major
    length_ref : (TB, 1)      float32
    w_ref      : (TV, O_PAD)  float32  fused (embed @ linear_w) vocab tile
    b_ref      : (1, O_PAD)   float32
    out_ref    : (TB, O_PAD)  float32
    acc_ref    : (TB, O_PAD)  float32 VMEM scratch (accumulator over vocab tiles)
    """
    k = pl.program_id(1)

    @pl.when(k == 0)
    def _init():
        acc_ref[...] = jnp.zeros_like(acc_ref)

    n_chunks, tb, _ = data_ref.shape
    tv = w_ref.shape[0]

    # Global vocab ids covered by this vocab tile.
    vocab_iota = jax.lax.broadcasted_iota(jnp.int32, (1, 1, tv), 2) + k * tv

    # counts[b, v] = #{s : data[b, s] == k*tv + v}; accumulate in int32 so only
    # the final (TB, TV) counts go through a single float convert.
    def body(c, counts):
        chunk = data_ref[c]                                        # (TB, SEQ_CHUNK)
        hits = (chunk[:, :, None] == vocab_iota).astype(jnp.int32)  # (TB, Sc, TV)
        return counts + jnp.sum(hits, axis=1)

    counts = jax.lax.fori_loop(
        0, n_chunks, body, jnp.zeros((tb, tv), jnp.int32), unroll=True)

    # counts @ fused_w == sum_s embed[data[b, s]] @ linear_w, restricted to this
    # vocab tile; f32 accumulation across tiles. (Counts are exact small ints; a
    # bf16 fused table would halve traffic at ~1e-3 rel error — kept f32 to match
    # the PyTorch f32 forward exactly.)
    acc_ref[...] += jnp.dot(counts.astype(jnp.float32), w_ref[...],
                            preferred_element_type=jnp.float32)

    @pl.when(k == pl.num_programs(1) - 1)
    def _finalize():
        inv_len = pl.reciprocal(length_ref[...], approx=True)      # (TB, 1) on EUP
        out_ref[...] = acc_ref[...] * inv_len + b_ref[...]


def bag_of_words(data, length, embed_table, linear_w, linear_b):
    """data: (B, S) int token ids (0 = pad); length: (B,); embed_table: (V, E);
    linear_w: (E, O) (transposed vs. PyTorch's (O, E)); linear_b: (O,).
    Returns (B, O) float32."""
    B, S = data.shape
    V, _ = embed_table.shape
    O = linear_w.shape[1]

    # One-time weight fold (static weights): (V, E) @ (E, O) -> (V, O).
    fused_w = jnp.dot(embed_table.astype(jnp.float32),
                      linear_w.astype(jnp.float32))

    # Pad to TPU-friendly tiles.
    o_pad = _round_up(max(O, 1), LANE)
    v_pad = _round_up(V, TV)
    s_pad = _round_up(S, SEQ_CHUNK)
    tb = LANE if B >= LANE else _round_up(B, 8)
    b_pad = _round_up(B, tb)
    n_chunks = s_pad // SEQ_CHUNK

    fused_w = jnp.pad(fused_w, ((0, v_pad - V), (0, o_pad - O)))
    bias = jnp.pad(linear_b.astype(jnp.float32).reshape(1, O),
                   ((0, 0), (0, o_pad - O)))

    # Sentinel token id `v_pad` is outside every vocab tile -> padded sequence
    # positions and padded batch rows contribute nothing.
    data_p = jnp.pad(data.astype(jnp.int32),
                     ((0, b_pad - B), (0, s_pad - S)), constant_values=v_pad)
    # Chunk-major layout: (n_chunks, b_pad, SEQ_CHUNK) so the kernel indexes
    # whole (TB, SEQ_CHUNK) chunks along the leading axis.
    data_p = data_p.reshape(b_pad, n_chunks, SEQ_CHUNK).transpose(1, 0, 2)

    length_p = jnp.pad(length.astype(jnp.float32).reshape(B, 1),
                       ((0, b_pad - B), (0, 0)), constant_values=1.0)

    grid = (b_pad // tb, v_pad // TV)

    out = pl.pallas_call(
        bow_kernel,
        out_shape=jax.ShapeDtypeStruct((b_pad, o_pad), jnp.float32),
        grid_spec=pltpu.PrefetchScalarGridSpec(
            num_scalar_prefetch=0,
            grid=grid,
            in_specs=[
                pl.BlockSpec((n_chunks, tb, SEQ_CHUNK), lambda i, k: (0, i, 0)),
                pl.BlockSpec((tb, 1), lambda i, k: (i, 0)),
                pl.BlockSpec((TV, o_pad), lambda i, k: (k, 0)),
                pl.BlockSpec((1, o_pad), lambda i, k: (0, 0)),
            ],
            out_specs=pl.BlockSpec((tb, o_pad), lambda i, k: (i, 0)),
            scratch_shapes=[pltpu.VMEM((tb, o_pad), jnp.float32)],
        ),
        compiler_params=pltpu.CompilerParams(
            dimension_semantics=("parallel", "arbitrary"),
            vmem_limit_bytes=32 * 1024 * 1024,   # safe on v5e/v6e/v7x; tiles are tiny
        ),
    )(data_p, length_p, fused_w, bias)

    return out[:B, :O]


def reference(data, length, embed_table, linear_w, linear_b):
    emb = jnp.take(embed_table, data, axis=0)            # (B, S, E)
    out = jnp.sum(emb, axis=1)                           # (B, E)
    out = out / length.astype(jnp.float32)[:, None]
    return jnp.dot(out, linear_w) + linear_b[None, :]


if __name__ == "__main__":
    vocab_size, emb_dim, out_dim = 1000, 32, 8
    batch, seq = 4, 12

    key = jax.random.PRNGKey(0)
    k_emb, k_w, k_b, k_data, k_len = jax.random.split(key, 5)

    # Parameter init (row 0 zeroed, as nn.Embedding(padding_idx=0) does at init).
    embed_table = jax.random.normal(k_emb, (vocab_size, emb_dim), jnp.float32)
    embed_table = embed_table.at[0].set(0.0)
    linear_w = (jax.random.normal(k_w, (emb_dim, out_dim), jnp.float32)
                / np.sqrt(emb_dim))
    linear_b = jax.random.normal(k_b, (out_dim,), jnp.float32) * 0.01

    # Synthetic padded batch: tokens in [1, vocab); positions >= length are 0 (pad).
    length = jax.random.randint(k_len, (batch,), 3, seq + 1)           # (B,)
    tokens = jax.random.randint(k_data, (batch, seq), 1, vocab_size)   # (B, S)
    pos = jnp.arange(seq)[None, :]
    data = jnp.where(pos < length[:, None], tokens, 0).astype(jnp.int32)

    out = bag_of_words(data, length, embed_table, linear_w, linear_b)
    out = jax.block_until_ready(out)

    ref = reference(data, length, embed_table, linear_w, linear_b)
    np.testing.assert_allclose(np.asarray(out), np.asarray(ref),
                               rtol=1e-4, atol=1e-4)
    print("KERNEL_OK")
</pallas_src>

<mosaic_0001>
module attributes {stable_mosaic.version = 11 : i64} {
  func.func @bow_kernel(%arg0: i32, %arg1: i32, %arg2: memref<2x8x8xi32, #tpu.memory_space<vmem>>, %arg3: memref<8x1xf32, #tpu.memory_space<vmem>>, %arg4: memref<256x128xf32, #tpu.memory_space<vmem>>, %arg5: memref<1x128xf32, #tpu.memory_space<vmem>>, %arg6: memref<8x128xf32, #tpu.memory_space<vmem>>, %arg7: memref<8x128xf32, #tpu.memory_space<vmem>>) attributes {dimension_semantics = [#tpu.dimension_semantics<parallel>, #tpu.dimension_semantics<arbitrary>], iteration_bounds = array<i64: 1, 4>, scalar_prefetch = 0 : i64, scratch_operands = 1 : i64, tpu.core_type = #tpu.core_type<tc>, window_params = [{transform_indices = @transform_0, window_bounds = array<i64: 2, 8, 8>}, {transform_indices = @transform_1, window_bounds = array<i64: 8, 1>}, {transform_indices = @transform_2, window_bounds = array<i64: 256, 128>}, {pipeline_mode = #tpu.pipeline_mode<synchronous>, transform_indices = @transform_3, window_bounds = array<i64: 1, 128>}, {transform_indices = @transform_4, window_bounds = array<i64: 8, 128>}]} {
    %c0_i32 = arith.constant 0 : i32
    %0 = arith.cmpi eq, %arg1, %c0_i32 : i32
    %1 = arith.extui %0 : i1 to i32
    %c0_i32_0 = arith.constant 0 : i32
    %2 = arith.cmpi ne, %1, %c0_i32_0 : i32
    scf.if %2 {
      %cst_15 = arith.constant 0.000000e+00 : f32
      %37 = vector.broadcast %cst_15 : f32 to vector<8x128xf32>
      %c0_16 = arith.constant 0 : index
      %c0_17 = arith.constant 0 : index
      %38 = vector.load %arg7[%c0_16, %c0_17] : memref<8x128xf32, #tpu.memory_space<vmem>>, vector<8x128xf32>
      tpu.vector_store %arg7[%c0_16, %c0_17], %37 {strides = array<i32>} : memref<8x128xf32, #tpu.memory_space<vmem>>, vector<8x128xf32>,
    } else {
    }
    %3 = tpu.iota {dimensions = array<i32: 2>} : vector<1x1x256xi32>
    %c256_i32 = arith.constant 256 : i32
    %4 = arith.muli %arg1, %c256_i32 : i32
    %5 = vector.broadcast %4 : i32 to vector<1x1x256xi32>
    %6 = arith.addi %3, %5 : vector<1x1x256xi32>
    %c0_i32_1 = arith.constant 0 : i32
    %7 = vector.broadcast %c0_i32_1 : i32 to vector<8x256xi32>
    %c0_i32_2 = arith.constant 0 : i32
    %8 = arith.index_cast %c0_i32_2 : i32 to index
    %c0 = arith.constant 0 : index
    %c0_3 = arith.constant 0 : index
    %9 = vector.load %arg2[%8, %c0, %c0_3] : memref<2x8x8xi32, #tpu.memory_space<vmem>>, vector<1x8x8xi32>
    %10 = vector.shape_cast %9 : vector<1x8x8xi32> to vector<8x8xi32>
    %11 = vector.shape_cast %10 : vector<8x8xi32> to vector<8x8x1xi32>
    %12 = vector.broadcast %11 : vector<8x8x1xi32> to vector<8x8x256xi32>
    %13 = vector.broadcast %6 : vector<1x1x256xi32> to vector<8x8x256xi32>
    %14 = arith.cmpi eq, %12, %13 : vector<8x8x256xi32>
    %15 = arith.extui %14 : vector<8x8x256xi1> to vector<8x8x256xi32>
    %cst = arith.constant dense<0> : vector<8x256xi32>
    %16 = vector.multi_reduction <add>, %15, %cst [1] : vector<8x8x256xi32> to vector<8x256xi32>
    %17 = arith.addi %7, %16 : vector<8x256xi32>
    %c1_i32 = arith.constant 1 : i32
    %18 = arith.index_cast %c1_i32 : i32 to index
    %c0_4 = arith.constant 0 : index
    %c0_5 = arith.constant 0 : index
    %19 = vector.load %arg2[%18, %c0_4, %c0_5] : memref<2x8x8xi32, #tpu.memory_space<vmem>>, vector<1x8x8xi32>
    %20 = vector.shape_cast %19 : vector<1x8x8xi32> to vector<8x8xi32>
    %21 = vector.shape_cast %20 : vector<8x8xi32> to vector<8x8x1xi32>
    %22 = vector.broadcast %21 : vector<8x8x1xi32> to vector<8x8x256xi32>
    %23 = vector.broadcast %6 : vector<1x1x256xi32> to vector<8x8x256xi32>
    %24 = arith.cmpi eq, %22, %23 : vector<8x8x256xi32>
    %25 = arith.extui %24 : vector<8x8x256xi1> to vector<8x8x256xi32>
    %cst_6 = arith.constant dense<0> : vector<8x256xi32>
    %26 = vector.multi_reduction <add>, %25, %cst_6 [1] : vector<8x8x256xi32> to vector<8x256xi32>
    %27 = arith.addi %17, %26 : vector<8x256xi32>
    %c2_i32 = arith.constant 2 : i32
    %c0_7 = arith.constant 0 : index
    %c0_8 = arith.constant 0 : index
    %28 = vector.load %arg7[%c0_7, %c0_8] : memref<8x128xf32, #tpu.memory_space<vmem>>, vector<8x128xf32>
    %29 = arith.sitofp %27 : vector<8x256xi32> to vector<8x256xf32>
    %c0_9 = arith.constant 0 : index
    %c0_10 = arith.constant 0 : index
    %30 = vector.load %arg4[%c0_9, %c0_10] : memref<256x128xf32, #tpu.memory_space<vmem>>, vector<256x128xf32>
    %cst_11 = arith.constant dense<0.000000e+00> : vector<8x128xf32>
    %31 = tpu.matmul %29, %30, %cst_11 {dimension_numbers = #tpu.dot_dimension_numbers<[1], [0], [0], [1], [0, 0, 1, 1], [], []>} : vector<8x256xf32>, vector<256x128xf32>, vector<8x128xf32> -> vector<8x128xf32>
    %32 = arith.addf %28, %31 : vector<8x128xf32>
    %c0_12 = arith.constant 0 : index
    %c0_13 = arith.constant 0 : index
    %33 = vector.load %arg7[%c0_12, %c0_13] : memref<8x128xf32, #tpu.memory_space<vmem>>, vector<8x128xf32>
    tpu.vector_store %arg7[%c0_12, %c0_13], %32 {strides = array<i32>} : memref<8x128xf32, #tpu.memory_space<vmem>>, vector<8x128xf32>,
    %c3_i32 = arith.constant 3 : i32
    %34 = arith.cmpi eq, %arg1, %c3_i32 : i32
    %35 = arith.extui %34 : i1 to i32
    %c0_i32_14 = arith.constant 0 : i32
    %36 = arith.cmpi ne, %35, %c0_i32_14 : i32
    scf.if %36 {
      %c0_15 = arith.constant 0 : index
      %c0_16 = arith.constant 0 : index
      %37 = vector.load %arg3[%c0_15, %c0_16] : memref<8x1xf32, #tpu.memory_space<vmem>>, vector<8x1xf32>
      %38 = tpu.reciprocal %37 {approx = true} : vector<8x1xf32> -> vector<8x1xf32>
      %c0_17 = arith.constant 0 : index
      %c0_18 = arith.constant 0 : index
      %39 = vector.load %arg7[%c0_17, %c0_18] : memref<8x128xf32, #tpu.memory_space<vmem>>, vector<8x128xf32>
      %40 = vector.broadcast %38 : vector<8x1xf32> to vector<8x128xf32>
      %41 = arith.mulf %39, %40 : vector<8x128xf32>
      %c0_19 = arith.constant 0 : index
      %c0_20 = arith.constant 0 : index
      %42 = vector.load %arg5[%c0_19, %c0_20] : memref<1x128xf32, #tpu.memory_space<vmem>>, vector<1x128xf32>
      %43 = vector.broadcast %42 : vector<1x128xf32> to vector<8x128xf32>
      %44 = arith.addf %41, %43 : vector<8x128xf32>
      %c0_21 = arith.constant 0 : index
      %c0_22 = arith.constant 0 : index
      %45 = vector.load %arg6[%c0_21, %c0_22] : memref<8x128xf32, #tpu.memory_space<vmem>>, vector<8x128xf32>
      tpu.vector_store %arg6[%c0_21, %c0_22], %44 {strides = array<i32>} : memref<8x128xf32, #tpu.memory_space<vmem>>, vector<8x128xf32>,
    } else {
    }
    return
  }
  func.func @transform_0(%arg0: i32, %arg1: i32) -> (i32, i32, i32) {
    %c0_i32 = arith.constant 0 : i32
    %c0_i32_0 = arith.constant 0 : i32
    %c0_i32_1 = arith.constant 0 : i32
    return %c0_i32, %arg0, %c0_i32_0 : i32, i32, i32
  }
  func.func @transform_1(%arg0: i32, %arg1: i32) -> (i32, i32) {
    %c0_i32 = arith.constant 0 : i32
    %c0_i32_0 = arith.constant 0 : i32
    return %arg0, %c0_i32 : i32, i32
  }
  func.func @transform_2(%arg0: i32, %arg1: i32) -> (i32, i32) {
    %c0_i32 = arith.constant 0 : i32
    %c0_i32_0 = arith.constant 0 : i32
    return %arg1, %c0_i32 : i32, i32
  }
  func.func @transform_3(%arg0: i32, %arg1: i32) -> (i32, i32) {
    %c0_i32 = arith.constant 0 : i32
    %c0_i32_0 = arith.constant 0 : i32
    %c0_i32_1 = arith.constant 0 : i32
    return %c0_i32, %c0_i32_0 : i32, i32
  }
  func.func @transform_4(%arg0: i32, %arg1: i32) -> (i32, i32) {
    %c0_i32 = arith.constant 0 : i32
    %c0_i32_0 = arith.constant 0 : i32
    return %arg0, %c0_i32 : i32, i32
  }
}

</mosaic_0001>

<bundles_post_ra>
// kernel: tpu_custom_call.1
= control target key start
LH: loop header
LB: loop body
LE: loop exit
PB: predicated region body
PF: predicated region fallthrough
CT: control target
= control target key end

     0   :  { %9 = vsyncpa [#allocation4], 0  ;;  %s1640_s0 = inlined_call_operand.hbm [shape: s32[2,8,8], index: 0, kind: input, shape index: {}]   ;;  %s1641_s1 = inlined_call_operand.vmem [shape: f32[8,1], index: 1, kind: input, shape index: {}]   ;;  %s1642_s2 = inlined_call_operand.hbm [shape: f32[1024,128], index: 2, kind: input, shape index: {}]   ;;  %s1643_s3 = inlined_call_operand.vmem [shape: f32[1,128], index: 3, kind: input, shape index: {}]   ;;  %s1644_s4 = inlined_call_operand.hbm [shape: f32[8,128], index: 4, kind: output, shape index: {}]  }
   0x1   :  { %10 = vsyncpa [#allocation7], 0 }
   0x2   :  { %12 = vsyncpa [#allocation7 + $0x1], 0 }
   0x3   :  { %13 = vsyncpa [#allocation5], 0  ;;  %s1286_s15 = smov 0   ;;  %s1288_s16 = smov 0  }
   0x4   :  { %s1290_s17 = smov 0   ;;  %s1292_s18 = smov 0  }
   0x5   :  { %s1294_s19 = smov 0   ;;  %s1296_s20 = smov 0  }
   0x6 LB: > { %s941_s21 = sadd.s32 4294967295, %s1251_s20   ;;  %p103_p0 = scmp.ne.s32.totalorder %s1235_s16, %s1231_s15  ;;  %s1251_s20 = sphi %s1296_s20, %s19_s20   ;;  %s1247_s19 = sphi %s1294_s19, %s1662_s19   ;;  %s1243_s18 = sphi %s1292_s18, %s1661_s18   ;;  %s1239_s17 = sphi %s1290_s17, %s1660_s17   ;;  %s1235_s16 = sphi %s1288_s16, %s1659_s16   ;;  %s1231_s15 = sphi %s1286_s15, %s1658_s15  }
   0x7   : > { %p1318_p1 = scmp.eq.s32.totalorder %s941_s21, 0  ;;  %p942_p2 = scmp.ge.s32.totalorder %s1251_s20, 1 }
   0x8   : > { %p161_p3 = scmp.lt.s32.totalorder %s1251_s20, 5  ;;  %s1253_s25 = smov [#allocation3]  }
   0x9   : > { %s1649_s22 = scalar_select %p1318_p1, 1, 0 }
   0xa   : > { %p1326_p4 = por %p1318_p1, %p103_p0  ;;  %p1330_p5 = pnand %p942_p2, %p161_p3 }
   0xb   : > { %s175_s26 = sshll.u32 %s1253_s25, 4  ;;  %s28_s28 = sadd.s32 1, %s1247_s19  ;;  %s176_s26 = int_to_ptr.vmem [resolvable:$true] %s175_s26 }
   0xc   : > { %s1650_s23 = scalar_select %p1326_p4, 1, 0 }
   0xd   : > { %s1651_s24 = scalar_select %p1330_p5, 1, 0 }
   0xe   : > { %p1038_p6 = pneg %p1330_p5  ;;  %s1109_s5 = scalar_lea.hbm %s1640_s0, 256 }
   0xf   : > { %p1110_p8 = scmp.ne.s32.totalorder %s1640_s0, %s1109_s5  ;;  %p1116_p12 = scmp.lt.u32.totalorder %s1109_s5, %s1640_s0 }
  0x10   : > { %p1338_p7 = pnand %p1038_p6, %p1318_p1 }
  0x12   : > { %p1111_p9 = pneg %p1338_p7 }
  0x14   : > { %p1112_p10 = pnand %p1111_p9, %p1110_p8 }
  0x16   : > { %p1113_p11 = pneg %p1112_p10 }
  0x18   : > { %p1118_p13 = pnand %p1116_p12, %p1113_p11 }
  0x1a   : > { %1121 = shalt.err (!%p1118_p13)
}
  0x1b   : > { %s1122_s10 = scalar_lea.vmem %s176_s26, 256  ;;  %p1130_p6 = scmp.lt.s32.totalorder %s176_s26, %s176_s26 }
  0x1c   : > { %p1123_p0 = scmp.ne.s32.totalorder %s176_s26, %s1122_s10  ;;  %p1131_p4 = scmp.lt.s32.totalorder %s1122_s10, %s1122_s10 }
  0x1e   : > { %p1125_p2 = pnand %p1123_p0, %p1111_p9  ;;  %p1132_p1 = por %p1131_p4, %p1130_p6 }
  0x20   : > { %p1126_p3 = pneg %p1125_p2 }
  0x22   : > { %p1133_p5 = pnand %p1132_p1, %p1126_p3 }
  0x24   : > { %1136 = shalt.err (!%p1133_p5)
}
  0x25   : > { %s1254_s11 = smov 128   ;;  %s1255_s12 = smov 8  }
  0x26   : > { %1041 = dma.hbm_to_vmem [thread:$0]  (!%p1338_p7), %s1640_s0, 256, %s176_s26, [#allocation4], %s1254_s11, %s1254_s11, %s1255_s12  }
  0x27   : > { %p29_p1 = scmp.ge.s32.totalorder %s28_s28, 4  ;;  %s90_s15 = sadd.s32 1, %s1239_s17 }
  0x28   : > { %p97_p4 = scmp.ne.s32.totalorder %s1239_s17, %s1235_s16  ;;  %p98_p5 = scmp.eq.s32.totalorder %s1251_s20, 0 }
  0x29   : > { %s1664_s28 = smov (%p29_p1, %s28_s28), 0  ;;  %p1047_p9 = scmp.lt.s32.totalorder %s1251_s20, 4 }
  0x2a   : > { %p99_p8 = por %p98_p5, %p97_p4  ;;  %s87_s25 = ssub.s32 %s1247_s19, %s1664_s28 }
  0x2b   : > { %s199_s29 = sand.u32 1, %s1239_s17   ;;  %p88_p10 = scmp.eq.s32.totalorder %s87_s25, 0 }
  0x2c   : > { %s946_s27 = sshll.u32 %s199_s29, 8  ;;  %s960_s30 = sshll.u32 %s1247_s19, 12 }
  0x2d   : > { %s1374_s5 = scalar_select %p88_p10, %s1239_s17, %s90_s15  }
  0x2e   : > { %s1379_s26 = scalar_lea.hbm %s1642_s2, %s960_s30  ;;  %s203_s8 = scalar_lea.vmem [#allocation6], %s946_s27 }
  0x2f   : > { %s210_s9 = sshll.u32 %s203_s8, 4  ;;  %p1381_p7 = pnand %p1047_p9, %p99_p8  ;;  %s1385_s9 = int_to_ptr.vmem [resolvable:$true] %s210_s9 }
  0x30   : > { %s1387_s13 = scalar_lea.sflag [#allocation7], %s199_s29  ;;  %s1137_s14 = scalar_lea.hbm %s1379_s26, 4096 }
  0x31   : > { %p1138_p11 = scmp.ne.s32.totalorder %s1379_s26, %s1137_s14  ;;  %p1139_p12 = pneg %p1381_p7 }
  0x32   : > { %s1142_s27 = scalar_lea.hbm %s1642_s2, 16384  ;;  %p1143_p2 = scmp.lt.u32.totalorder %s1379_s26, %s1642_s2 }
  0x33   : > { %p1140_p13 = pnand %p1139_p12, %p1138_p11  ;;  %p1144_p3 = scmp.lt.u32.totalorder %s1142_s27, %s1137_s14 }
  0x34   : > { %p1146_p1 = scmp.lt.u32.totalorder %s1137_s14, %s1379_s26 }
  0x35   : > { %p1141_p0 = pneg %p1140_p13  ;;  %p1145_p6 = por %p1144_p3, %p1143_p2 }
  0x37   : > { %p1147_p4 = por %p1146_p1, %p1145_p6 }
  0x39   : > { %p1148_p5 = pnand %p1147_p4, %p1141_p0 }
  0x3b   : > { %1151 = shalt.err (!%p1148_p5)
}
  0x3c   : > { %s1152_s29 = scalar_lea.vmem %s1385_s9, 4096  ;;  %s1256_s7 = smov [#allocation6]  }
  0x3d   : > { %p1153_p8 = scmp.ne.s32.totalorder %s1385_s9, %s1152_s29  ;;  %s1157_s8 = sshll.u32 %s1256_s7, 4  ;;  %s1158_s8 = int_to_ptr.vmem [resolvable:$false] %s1157_s8 }
  0x3e   : > { %s1159_s15 = scalar_lea.vmem %s1158_s8, 8192  ;;  %p1160_p11 = scmp.lt.s32.totalorder %s1385_s9, %s1158_s8 }
  0x3f   : > { %p1155_p9 = pnand %p1153_p8, %p1139_p12  ;;  %p1161_p13 = scmp.lt.s32.totalorder %s1159_s15, %s1152_s29 }
  0x41   : > { %p1156_p10 = pneg %p1155_p9  ;;  %p1162_p2 = por %p1161_p13, %p1160_p11 }
  0x43   : > { %p1163_p3 = pnand %p1162_p2, %p1156_p10 }
  0x45   : > { %1166 = shalt.err (!%p1163_p3)
}
  0x46   : > { %1045 = dma.hbm_to_vmem [thread:$0]  (!%p1381_p7), %s1379_s26, 4096, %s1385_s9, %s1387_s13, %s1254_s11, %s1254_s11, %s1255_s12  }
  0x47   : > { %p1654_p12 = scmp.ne.s32.totalorder %s1651_s24, 0 }
  0x48   : > { %p1655_p0 = scmp.ne.s32.totalorder (!%p1654_p12), %s1649_s22, 0 }
  0x49   : > { %222 = sbr.rel (%p1654_p12) target bundleno = 553 (0x229), region = 36 }
  0x50   : > { %1218 = dma.done.wait (%p1655_p0), [#allocation4], 256  }
  0x51   : > { %1220 = vsyncadd (%p1655_p0), [#allocation4], 4294967040  ;;  %s228_s14 = sand.u32 1, %s1235_s16   ;;  %p1656_p6 = scmp.ne.s32.totalorder %s1650_s23, 0 }
  0x52   : > { %s951_s10 = sshll.u32 %s228_s14, 8  ;;  %s229_s25 = scalar_lea.sflag [#allocation7], %s228_s14 }
  0x53   : > { %s1425_s27 = scalar_lea.vmem [#allocation6], %s951_s10 }
  0x54   : > { %1222 = dma.done.wait (%p1656_p6), %s229_s25, 4096  }
  0x55   : > { %1224 = vsyncadd (%p1656_p6), %s229_s25, 4294963200  ;;  %p952_p7 = scmp.ne.s32.totalorder %s1243_s18, 0 }
  0x56   : > { %v1257_v0 = vmov (!%p952_p7), 0.0  }
  0x57   : > { %264 = sbr.rel (%p952_p7) target bundleno = 94 (0x5e), region = 48  ;;  %265 = vst [vmem:[#allocation2] sm:$0xff] (!%p952_p7), %v1257_v0 }
  0x5e PF: > { %v266_v1 = vlaneseq  ;;  %v459_v3 = vld [vmem:[#allocation3 + $0x8] sm:$0xff]  ;;  %v273_v4 = vld [vmem:[#allocation3] sm:$0xff]  ;;  %v693_v27 = vld [vmem:[%s1425_s27 + $0x80] sm:$0xff]  ;;  %s953_s22 = sshll.u32 %s1243_s18, 8  ;;  %p954_p1 = scmp.ne.s32.totalorder %s1243_s18, 3 }
  0x5f   : > { %v694_v28 = vld [vmem:[%s1425_s27 + $0x88] sm:$0xff]  ;;  %v677_v30 = vld [vmem:[%s1425_s27] sm:$0xff]  ;;  %v695_v35 = vld [vmem:[%s1425_s27 + $0x90] sm:$0xff] }
  0x60   : > { %v275_v2 = vshrl.u32 %v266_v1, 7  ;;  %v996_v29 = vpack.c.bf16 %v694_v28, %v693_v27  ;;  %v678_v31 = vld [vmem:[%s1425_s27 + $0x8] sm:$0xff]  ;;  %v696_v36 = vld [vmem:[%s1425_s27 + $0x98] sm:$0xff]  ;;  %v679_v38 = vld [vmem:[%s1425_s27 + $0x10] sm:$0xff] }
  0x61   : > { %v998_v34 = vpack.c.bf16 %v678_v31, %v677_v30  ;;  %v1000_v37 = vpack.c.bf16 %v696_v36, %v695_v35  ;;  %v680_v39 = vld [vmem:[%s1425_s27 + $0x18] sm:$0xff]  ;;  %v697_v41 = vld [vmem:[%s1425_s27 + $0xa0] sm:$0xff]  ;;  %v698_v42 = vld [vmem:[%s1425_s27 + $0xa8] sm:$0xff] }
  0x62   : > { %v276_v5 = vsub.s32 0, %v275_v2  ;;  %v283_v6 = vsub.s32 1, %v275_v2  ;;  %v290_v11 = vsub.s32 2, %v275_v2  ;;  %v297_v14 = vsub.s32 3, %v275_v2  ;;  %997 = vmatprep.subr.bf16.mxu0 %v996_v29  ;;  %v681_v44 = vld [vmem:[%s1425_s27 + $0x20] sm:$0xff]  ;;  %v682_v45 = vld [vmem:[%s1425_s27 + $0x28] sm:$0xff] }
  0x63   : > { %v304_v17 = vsub.s32 4, %v275_v2  ;;  %v311_v20 = vsub.s32 5, %v275_v2  ;;  %v318_v23 = vsub.s32 6, %v275_v2  ;;  %v325_v26 = vsub.s32 7, %v275_v2  ;;  %999 = vmatpush3.bf16.msra.mxu0 %v998_v34  ;;  %v699_v47 = vld [vmem:[%s1425_s27 + $0xb0] sm:$0xff]  ;;  %v700_v48 = vld [vmem:[%s1425_s27 + $0xb8] sm:$0xff] }
  0x64   : > { %v463_v7 = vrot.slane %v459_v3, %v276_v5  ;;  %v277_v8 = vrot.slane %v273_v4, %v276_v5  ;;  %v470_v9 = vrot.slane %v459_v3, %v283_v6  ;;  %v284_v10 = vrot.slane %v273_v4, %v283_v6  ;;  %1001 = vmatprep.subr.bf16.mxu0 %v1000_v37  ;;  %v683_v50 = vld [vmem:[%s1425_s27 + $0x30] sm:$0xff]  ;;  %v684_v51 = vld [vmem:[%s1425_s27 + $0x38] sm:$0xff]  ;;  %v701_v53 = vld [vmem:[%s1425_s27 + $0xc0] sm:$0xff] }
  0x65   : > { %v477_v12 = vrot.slane %v459_v3, %v290_v11  ;;  %v291_v13 = vrot.slane %v273_v4, %v290_v11  ;;  %v484_v15 = vrot.slane %v459_v3, %v297_v14  ;;  %v298_v16 = vrot.slane %v273_v4, %v297_v14  ;;  %v702_v54 = vld [vmem:[%s1425_s27 + $0xc8] sm:$0xff]  ;;  %v685_v56 = vld [vmem:[%s1425_s27 + $0x40] sm:$0xff]  ;;  %v703_v59 = vld [vmem:[%s1425_s27 + $0xd0] sm:$0xff] }
  0x66   : > { %465 = vbcast.lane.b32.xlu1 %v463_v7, 256  ;;  %279 = vbcast.lane.b32.xlu0 %v277_v8, 256  ;;  %v491_v18 = vrot.slane %v459_v3, %v304_v17  ;;  %v305_v19 = vrot.slane %v273_v4, %v304_v17  ;;  %v498_v21 = vrot.slane %v459_v3, %v311_v20  ;;  %v686_v57 = vld [vmem:[%s1425_s27 + $0x48] sm:$0xff]  ;;  %v704_v60 = vld [vmem:[%s1425_s27 + $0xd8] sm:$0xff]  ;;  %v687_v62 = vld [vmem:[%s1425_s27 + $0x50] sm:$0xff]  ;;  %v267_v14 = vand.u32 127, %v266_v1 }
  0x67   : > { %v312_v22 = vrot.slane %v273_v4, %v311_v20  ;;  %v505_v24 = vrot.slane %v459_v3, %v318_v23  ;;  %v319_v25 = vrot.slane %v273_v4, %v318_v23  ;;  %v512_v32 = vrot.slane %v459_v3, %v325_v26  ;;  %v688_v63 = vld [vmem:[%s1425_s27 + $0x58] sm:$0xff]  ;;  %v705_v2 = vld [vmem:[%s1425_s27 + $0xe0] sm:$0xff]  ;;  %v706_v3 = vld [vmem:[%s1425_s27 + $0xe8] sm:$0xff] }
  0x68   : > { %v326_v33 = vrot.slane %v273_v4, %v325_v26  ;;  %v1002_v40 = vpack.c.bf16 %v680_v39, %v679_v38  ;;  %v1004_v43 = vpack.c.bf16 %v698_v42, %v697_v41  ;;  %v1006_v46 = vpack.c.bf16 %v682_v45, %v681_v44  ;;  %v689_v5 = vld [vmem:[%s1425_s27 + $0x60] sm:$0xff]  ;;  %v690_v6 = vld [vmem:[%s1425_s27 + $0x68] sm:$0xff]  ;;  %v707_v8 = vld [vmem:[%s1425_s27 + $0xf0] sm:$0xff] }
  0x69   : > { %v1008_v49 = vpack.c.bf16 %v700_v48, %v699_v47  ;;  %v1010_v52 = vpack.c.bf16 %v684_v51, %v683_v50  ;;  %v1012_v55 = vpack.c.bf16 %v702_v54, %v701_v53  ;;  %v1014_v58 = vpack.c.bf16 %v686_v57, %v685_v56 }
  0x6a   : > { %472 = vbcast.lane.b32.xlu1 %v470_v9, 256  ;;  %286 = vbcast.lane.b32.xlu0 %v284_v10, 256  ;;  %v1016_v61 = vpack.c.bf16 %v704_v60, %v703_v59  ;;  %v1018_v0 = vpack.c.bf16 %v688_v63, %v687_v62  ;;  %v1020_v4 = vpack.c.bf16 %v706_v3, %v705_v2  ;;  %v708_v9 = vld [vmem:[%s1425_s27 + $0xf8] sm:$0xff]  ;;  %v691_v10 = vld [vmem:[%s1425_s27 + $0x70] sm:$0xff] }
  0x6b   : > { %1003 = vmatpush3.bf16.msra.mxu0 %v1002_v40  ;;  %v1022_v7 = vpack.c.bf16 %v690_v6, %v689_v5  ;;  %v1024_v11 = vpack.c.bf16 %v708_v9, %v707_v8 }
  0x6c   : > { %1005 = vmatprep.subr.bf16.mxu0 %v1004_v43 }
  0x6e   : > { %479 = vbcast.lane.b32.xlu1 %v477_v12, 256  ;;  %293 = vbcast.lane.b32.xlu0 %v291_v13, 256  ;;  %v692_v12 = vld [vmem:[%s1425_s27 + $0x78] sm:$0xff] }
  0x6f   : > { %1007 = vmatpush3.bf16.msra.mxu0 %v1006_v46  ;;  %v1026_v13 = vpack.c.bf16 %v692_v12, %v691_v10 }
  0x70   : > { %1009 = vmatprep.subr.bf16.mxu0 %v1008_v49 }
  0x72   : > { %486 = vbcast.lane.b32.xlu1 %v484_v15, 256  ;;  %300 = vbcast.lane.b32.xlu0 %v298_v16, 256  ;;  %v268_v15 = vadd.s32 128, %v267_v14  ;;  %v270_v16 = vstv %s953_s22 }
  0x73   : > { %1011 = vmatpush3.bf16.msra.mxu0 %v1010_v52  ;;  %v1467_v17 = vadd.s32 %v270_v16, %v267_v14 }
  0x74   : > { %1013 = vmatprep.subr.bf16.mxu0 %v1012_v55 }
  0x76   : > { %493 = vbcast.lane.b32.xlu1 %v491_v18, 256  ;;  %307 = vbcast.lane.b32.xlu0 %v305_v19, 256  ;;  %v1469_v18 = vadd.s32 %v270_v16, %v268_v15 }
  0x77   : > { %1015 = vmatpush3.bf16.msra.mxu0 %v1014_v58 }
  0x78   : > { %1017 = vmatprep.subr.bf16.mxu0 %v1016_v61 }
  0x7a   : > { %500 = vbcast.lane.b32.xlu1 %v498_v21, 256  ;;  %314 = vbcast.lane.b32.xlu0 %v312_v22, 256  ;;  %v1258_v21 = vmov 0  }
  0x7b   : > { %1019 = vmatpush3.bf16.msra.mxu0 %v1018_v0 }
  0x7c   : > { %1021 = vmatprep.subr.bf16.mxu0 %v1020_v4 }
  0x7e   : > { %507 = vbcast.lane.b32.xlu1 %v505_v24, 256  ;;  %321 = vbcast.lane.b32.xlu0 %v319_v25, 256 }
  0x7f   : > { %1023 = vmatpush3.bf16.msra.mxu0 %v1022_v7 }
  0x80   : > { %1025 = vmatprep.subr.bf16.mxu0 %v1024_v11 }
  0x82   : > { %514 = vbcast.lane.b32.xlu1 %v512_v32, 256  ;;  %328 = vbcast.lane.b32.xlu0 %v326_v33, 256 }
  0x83   : > { %1027 = vmatpush3.bf16.msra.mxu0 %v1026_v13 }
  0xd8   : > { %v466_v19 = vpop.permute.xlu1 %465  ;;  %v280_v20 = vpop.permute.xlu0 %279 }
  0xd9   : > { %vm516_vm0 = vcmp.eq.s32.totalorder %v466_v19, %v1467_v17  ;;  %vm517_vm1 = vcmp.eq.s32.totalorder %v466_v19, %v1469_v18  ;;  %vm330_vm2 = vcmp.eq.s32.totalorder %v280_v20, %v1467_v17  ;;  %vm331_vm3 = vcmp.eq.s32.totalorder %v280_v20, %v1469_v18 }
  0xda   : > { %v532_v1 = vsel %vm516_vm0, 1, %v1258_v21  ;;  %v533_v22 = vsel %vm517_vm1, 1, %v1258_v21  ;;  %v346_v23 = vsel %vm330_vm2, 1, %v1258_v21  ;;  %v347_v24 = vsel %vm331_vm3, 1, %v1258_v21 }
  0xdb   : > { %v548_v25 = vrot.slane %v532_v1, 4  ;;  %v554_v26 = vrot.slane %v533_v22, 4  ;;  %v362_v27 = vrot.slane %v346_v23, 4  ;;  %v368_v28 = vrot.slane %v347_v24, 4 }
  0xdc   : > { %v473_v29 = vpop.permute.xlu1 %472  ;;  %v287_v30 = vpop.permute.xlu0 %286  ;;  %vm725_vm2 = vcmask 1041409  }
  0xdd   : > { %v549_v31 = vadd.s32 %v548_v25, %v532_v1  ;;  %v363_v32 = vadd.s32 %v362_v27, %v346_v23  ;;  %vm518_vm4 = vcmp.eq.s32.totalorder %v473_v29, %v1467_v17  ;;  %vm519_vm5 = vcmp.eq.s32.totalorder %v473_v29, %v1469_v18 }
  0xde   : > { %vm332_vm6 = vcmp.eq.s32.totalorder %v287_v30, %v1467_v17  ;;  %vm333_vm7 = vcmp.eq.s32.totalorder %v287_v30, %v1469_v18  ;;  %v555_v34 = vadd.s32 %v554_v26, %v533_v22  ;;  %v369_v35 = vadd.s32 %v368_v28, %v347_v24 }
  0xdf   : > { %v550_v33 = vrot.slane %v549_v31, 2  ;;  %v534_v36 = vsel %vm518_vm4, 1, %v1258_v21  ;;  %v535_v37 = vsel %vm519_vm5, 1, %v1258_v21  ;;  %v348_v38 = vsel %vm332_vm6, 1, %v1258_v21 }
  0xe0   : > { %v349_v39 = vsel %vm333_vm7, 1, %v1258_v21  ;;  %v364_v40 = vrot.slane %v363_v32, 2  ;;  %v560_v41 = vrot.slane %v534_v36, 4  ;;  %v566_v42 = vrot.slane %v535_v37, 4  ;;  %v480_v50 = vpop.permute.xlu1 %479  ;;  %v294_v59 = vpop.permute.xlu0 %293 }
  0xe1   : > { %v374_v43 = vrot.slane %v348_v38, 4  ;;  %v380_v44 = vrot.slane %v349_v39, 4  ;;  %v556_v45 = vrot.slane %v555_v34, 2  ;;  %v551_v46 = vadd.s32 %v550_v33, %v549_v31 }
  0xe2   : > { %v370_v47 = vrot.slane %v369_v35, 2  ;;  %v561_v48 = vadd.s32 %v560_v41, %v534_v36  ;;  %v365_v51 = vadd.s32 %v364_v40, %v363_v32  ;;  %v567_v53 = vadd.s32 %v566_v42, %v535_v37 }
  0xe3   : > { %v375_v49 = vadd.s32 %v374_v43, %v348_v38  ;;  %v381_v54 = vadd.s32 %v380_v44, %v349_v39  ;;  %vm520_vm8 = vcmp.eq.s32.totalorder %v480_v50, %v1467_v17  ;;  %vm521_vm9 = vcmp.eq.s32.totalorder %v480_v50, %v1469_v18 }
  0xe4   : > { %v562_v52 = vrot.slane %v561_v48, 2  ;;  %v552_v55 = vrot.slane %v551_v46, 1  ;;  %v557_v56 = vadd.s32 %v556_v45, %v555_v34  ;;  %v371_v57 = vadd.s32 %v370_v47, %v369_v35  ;;  %v487_v9 = vpop.permute.xlu1 %486  ;;  %v301_v26 = vpop.permute.xlu0 %300 }
  0xe5   : > { %v376_v58 = vrot.slane %v375_v49, 2  ;;  %v536_v60 = vsel %vm520_vm8, 1, %v1258_v21  ;;  %v537_v61 = vsel %vm521_vm9, 1, %v1258_v21  ;;  %v366_v62 = vrot.slane %v365_v51, 1 }
  0xe6   : > { %v563_v63 = vadd.s32 %v562_v52, %v561_v48  ;;  %v568_v0 = vrot.slane %v567_v53, 2  ;;  %v382_v2 = vrot.slane %v381_v54, 2  ;;  %v572_v3 = vrot.slane %v536_v60, 4 }
  0xe7   : > { %v578_v4 = vrot.slane %v537_v61, 4  ;;  %vm334_vm10 = vcmp.eq.s32.totalorder %v294_v59, %v1467_v17  ;;  %vm335_vm11 = vcmp.eq.s32.totalorder %v294_v59, %v1469_v18  ;;  %v553_v5 = vadd.s32 %v552_v55, %v551_v46 }
  0xe8   : > { %v558_v6 = vrot.slane %v557_v56, 1  ;;  %v372_v7 = vrot.slane %v371_v57, 1  ;;  %v377_v8 = vadd.s32 %v376_v58, %v375_v49  ;;  %v573_v10 = vadd.s32 %v572_v3, %v536_v60  ;;  %v494_v40 = vpop.permute.xlu1 %493 }
  0xe9   : > { %v579_v11 = vadd.s32 %v578_v4, %v537_v61  ;;  %v350_v12 = vsel %vm334_vm10, 1, %v1258_v21  ;;  %v351_v13 = vsel %vm335_vm11, 1, %v1258_v21  ;;  %v367_v14 = vadd.s32 %v366_v62, %v365_v51  ;;  %v308_v4 = vpop.permute.xlu0 %307 }
  0xea   : > { %v569_v15 = vadd.s32 %v568_v0, %v567_v53  ;;  %v386_v16 = vrot.slane %v350_v12, 4  ;;  %v392_v19 = vrot.slane %v351_v13, 4  ;;  %v564_v20 = vrot.slane %v563_v63, 1 }
  0xeb   : > { %v383_v1 = vadd.s32 %v382_v2, %v381_v54  ;;  %vm522_vm12 = vcmp.eq.s32.totalorder %v487_v9, %v1467_v17  ;;  %vm523_vm13 = vcmp.eq.s32.totalorder %v487_v9, %v1469_v18  ;;  %v378_v22 = vrot.slane %v377_v8, 1 }
  0xec   : > { %v574_v23 = vrot.slane %v573_v10, 2  ;;  %v387_v24 = vadd.s32 %v386_v16, %v350_v12  ;;  %v393_v25 = vadd.s32 %v392_v19, %v351_v13  ;;  %v559_v27 = vadd.s32 %v558_v6, %v557_v56  ;;  %v501_v9 = vpop.permute.xlu1 %500 }
  0xed   : > { %v373_v28 = vadd.s32 %v372_v7, %v371_v57  ;;  %v580_v29 = vrot.slane %v579_v11, 2  ;;  %v570_v30 = vrot.slane %v569_v15, 1  ;;  %v538_v32 = vsel %vm522_vm12, 1, %v1258_v21 }
  0xee   : > { %v388_v31 = vrot.slane %v387_v24, 2  ;;  %v539_v33 = vsel %vm523_vm13, 1, %v1258_v21  ;;  %v1499_v34 = vadd.s32 %v553_v5, %v367_v14  ;;  %v565_v35 = vadd.s32 %v564_v20, %v563_v63 }
  0xef   : > { %v384_v36 = vrot.slane %v383_v1, 1  ;;  %vm336_vm14 = vcmp.eq.s32.totalorder %v301_v26, %v1467_v17  ;;  %v379_v37 = vadd.s32 %v378_v22, %v377_v8  ;;  %v575_v38 = vadd.s32 %v574_v23, %v573_v10 }
  0xf0   : > { %v394_v39 = vrot.slane %v393_v25, 2  ;;  %vm337_vm15 = vcmp.eq.s32.totalorder %v301_v26, %v1469_v18  ;;  %v581_v41 = vadd.s32 %v580_v29, %v579_v11  ;;  %v584_v42 = vrot.slane %v538_v32, 4 }
  0xf1   : > { %v590_v43 = vrot.slane %v539_v33, 4  ;;  %v352_v44 = vsel %vm336_vm14, 1, %v1258_v21  ;;  %v1504_v45 = vadd.s32 %v559_v27, %v373_v28  ;;  %v571_v46 = vadd.s32 %v570_v30, %v569_v15 }
  0xf2   : > { %v389_v47 = vadd.s32 %v388_v31, %v387_v24  ;;  %v353_v48 = vsel %vm337_vm15, 1, %v1258_v21  ;;  %v385_v49 = vadd.s32 %v384_v36, %v383_v1  ;;  %v398_v50 = vrot.slane %v352_v44, 4 }
  0xf3   : > { %v404_v51 = vrot.slane %v353_v48, 4  ;;  %vm524_vm0 = vcmp.eq.s32.totalorder %v494_v40, %v1467_v17  ;;  %v646_v52 = vadd.s32 %v565_v35, %v379_v37  ;;  %v576_v53 = vrot.slane %v575_v38, 1 }
  0xf4   : > { %v395_v54 = vadd.s32 %v394_v39, %v393_v25  ;;  %vm525_vm1 = vcmp.eq.s32.totalorder %v494_v40, %v1469_v18  ;;  %v582_v55 = vrot.slane %v581_v41, 1  ;;  %v585_v56 = vadd.s32 %v584_v42, %v538_v32  ;;  %v315_v40 = vpop.permute.xlu0 %314 }
  0xf5   : > { %v591_v57 = vadd.s32 %v590_v43, %v539_v33  ;;  %v540_v58 = vsel %vm524_vm0, 1, %v1258_v21  ;;  %v661_v59 = vcvt.s32.f32 %v1499_v34  ;;  %v662_v60 = vcvt.s32.f32 %v1504_v45 }
  0xf6   : > { %v390_v61 = vrot.slane %v389_v47, 1  ;;  %v541_v62 = vsel %vm525_vm1, 1, %v1258_v21  ;;  %v1513_v63 = vadd.s32 %v571_v46, %v385_v49  ;;  %v399_v0 = vadd.s32 %v398_v50, %v352_v44  ;;  %v508_v46 = vpop.permute.xlu1 %507 }
  0xf7   : > { %v405_v2 = vadd.s32 %v404_v51, %v353_v48  ;;  %v596_v3 = vrot.slane %v540_v58, 4  ;;  %v663_v5 = vcvt.s32.f32 %v646_v52  ;;  %v577_v6 = vadd.s32 %v576_v53, %v575_v38 }
  0xf8   : > { %v396_v7 = vrot.slane %v395_v54, 1  ;;  %v602_v8 = vrot.slane %v541_v62, 4  ;;  %v583_v10 = vadd.s32 %v582_v55, %v581_v41  ;;  %v586_v11 = vrot.slane %v585_v56, 2 }
  0xf9   : > { %v592_v12 = vrot.slane %v591_v57, 2  ;;  %v597_v13 = vadd.s32 %v596_v3, %v540_v58  ;;  %v391_v14 = vadd.s32 %v390_v61, %v389_v47  ;;  %vm338_vm3 = vcmp.eq.s32.totalorder %v308_v4, %v1467_v17 }
  0xfa   : > { %v603_v15 = vadd.s32 %v602_v8, %v541_v62  ;;  %vm339_vm4 = vcmp.eq.s32.totalorder %v308_v4, %v1469_v18  ;;  %v400_v16 = vrot.slane %v399_v0, 2  ;;  %v406_v19 = vrot.slane %v405_v2, 2 }
  0xfb   : > { %v354_v20 = vsel %vm338_vm3, 1, %v1258_v21  ;;  %vm526_vm5 = vcmp.eq.s32.totalorder %v501_v9, %v1467_v17  ;;  %v397_v1 = vadd.s32 %v396_v7, %v395_v54  ;;  %v355_v22 = vsel %vm339_vm4, 1, %v1258_v21 }
  0xfc   : > { %v410_v23 = vrot.slane %v354_v20, 4  ;;  %vm527_vm6 = vcmp.eq.s32.totalorder %v501_v9, %v1469_v18  ;;  %v587_v24 = vadd.s32 %v586_v11, %v585_v56  ;;  %v593_v25 = vadd.s32 %v592_v12, %v591_v57 }
  0xfd   : > { %v598_v26 = vrot.slane %v597_v13, 2  ;;  %v416_v27 = vrot.slane %v355_v22, 4  ;;  %v604_v28 = vrot.slane %v603_v15, 2  ;;  %v542_v30 = vsel %vm526_vm5, 1, %v1258_v21 }
  0xfe   : > { %v411_v29 = vadd.s32 %v410_v23, %v354_v20  ;;  %v543_v31 = vsel %vm527_vm6, 1, %v1258_v21  ;;  %v664_v32 = vcvt.s32.f32 %v1513_v63  ;;  %v401_v33 = vadd.s32 %v400_v16, %v399_v0 }
  0xff   : > { %v407_v34 = vadd.s32 %v406_v19, %v405_v2  ;;  %v417_v35 = vadd.s32 %v416_v27, %v355_v22  ;;  %v1525_v36 = vsel %vm725_vm2, %v663_v5, %v661_v59  ;;  %v1527_v37 = vadd.s32 %v577_v6, %v391_v14  ;;  %v322_v14 = vpop.permute.xlu0 %321 }
 0x100   : > { %v608_v38 = vrot.slane %v542_v30, 4  ;;  %v614_v39 = vrot.slane %v543_v31, 4  ;;  %v1529_v41 = vadd.s32 %v583_v10, %v397_v1  ;;  %v588_v42 = vrot.slane %v587_v24, 1  ;;  %v515_v1 = vpop.permute.xlu1 %514 }
 0x101   : > { %v594_v43 = vrot.slane %v593_v25, 1  ;;  %v599_v44 = vadd.s32 %v598_v26, %v597_v13  ;;  %v605_v47 = vadd.s32 %v604_v28, %v603_v15  ;;  %v412_v48 = vrot.slane %v411_v29, 2 }
 0x102   : > { %v418_v49 = vrot.slane %v417_v35, 2  ;;  %v609_v50 = vadd.s32 %v608_v38, %v542_v30  ;;  %v402_v51 = vrot.slane %v401_v33, 1  ;;  %v408_v52 = vrot.slane %v407_v34, 1 }
 0x103   : > { %vm340_vm7 = vcmp.eq.s32.totalorder %v315_v40, %v1467_v17  ;;  %vm341_vm8 = vcmp.eq.s32.totalorder %v315_v40, %v1469_v18  ;;  %v615_v54 = vadd.s32 %v614_v39, %v543_v31  ;;  %vm528_vm9 = vcmp.eq.s32.totalorder %v508_v46, %v1467_v17 }
 0x104   : > { %v610_v53 = vrot.slane %v609_v50, 2  ;;  %v356_v55 = vsel %vm340_vm7, 1, %v1258_v21  ;;  %v600_v56 = vrot.slane %v599_v44, 1  ;;  %v357_v57 = vsel %vm341_vm8, 1, %v1258_v21 }
 0x105   : > { %v422_v58 = vrot.slane %v356_v55, 4  ;;  %vm529_vm10 = vcmp.eq.s32.totalorder %v508_v46, %v1469_v18  ;;  %v606_v59 = vrot.slane %v605_v47, 1  ;;  %v413_v61 = vadd.s32 %v412_v48, %v411_v29 }
 0x106   : > { %v419_v62 = vadd.s32 %v418_v49, %v417_v35  ;;  %v428_v0 = vrot.slane %v357_v57, 4  ;;  %v1537_v2 = vadd.s32 %v588_v42, %v587_v24  ;;  %v544_v4 = vsel %vm528_vm9, 1, %v1258_v21  ;;  %v329_v42 = vpop.permute.xlu0 %328 }
 0x107   : > { %v423_v3 = vadd.s32 %v422_v58, %v356_v55  ;;  %v545_v5 = vsel %vm529_vm10, 1, %v1258_v21  ;;  %v1541_v6 = vadd.s32 %v594_v43, %v593_v25  ;;  %v611_v7 = vadd.s32 %v610_v53, %v609_v50 }
 0x108   : > { %v616_v8 = vrot.slane %v615_v54, 2  ;;  %v429_v9 = vadd.s32 %v428_v0, %v357_v57  ;;  %v1543_v10 = vadd.s32 %v402_v51, %v401_v33  ;;  %v1545_v11 = vadd.s32 %v408_v52, %v407_v34 }
 0x109   : > { %v620_v12 = vrot.slane %v544_v4, 4  ;;  %v626_v13 = vrot.slane %v545_v5, 4  ;;  %v1547_v15 = vadd.s32 %v600_v56, %v599_v44  ;;  %v1549_v16 = vadd.s32 %v606_v59, %v605_v47 }
 0x10a   : > { %v414_v19 = vrot.slane %v413_v61, 1  ;;  %v420_v20 = vrot.slane %v419_v62, 1  ;;  %v424_v22 = vrot.slane %v423_v3, 2  ;;  %v430_v23 = vrot.slane %v429_v9, 2 }
 0x10b   : > { %v621_v24 = vadd.s32 %v620_v12, %v544_v4  ;;  %v627_v25 = vadd.s32 %v626_v13, %v545_v5  ;;  %v612_v26 = vrot.slane %v611_v7, 1  ;;  %v617_v27 = vadd.s32 %v616_v8, %v615_v54 }
 0x10c   : > { %vm342_vm11 = vcmp.eq.s32.totalorder %v322_v14, %v1467_v17  ;;  %vm343_vm12 = vcmp.eq.s32.totalorder %v322_v14, %v1469_v18  ;;  %vm530_vm13 = vcmp.eq.s32.totalorder %v515_v1, %v1467_v17  ;;  %v415_v31 = vadd.s32 %v414_v19, %v413_v61 }
 0x10d   : > { %v622_v28 = vrot.slane %v621_v24, 2  ;;  %v628_v29 = vrot.slane %v627_v25, 2  ;;  %v358_v30 = vsel %vm342_vm11, 1, %v1258_v21  ;;  %v359_v33 = vsel %vm343_vm12, 1, %v1258_v21 }
 0x10e   : > { %v434_v34 = vrot.slane %v358_v30, 4  ;;  %vm531_vm14 = vcmp.eq.s32.totalorder %v515_v1, %v1469_v18  ;;  %v425_v35 = vadd.s32 %v424_v22, %v423_v3  ;;  %v431_v38 = vadd.s32 %v430_v23, %v429_v9 }
 0x10f   : > { %v623_v39 = vadd.s32 %v622_v28, %v621_v24  ;;  %v440_v40 = vrot.slane %v359_v33, 4  ;;  %v421_v43 = vadd.s32 %v420_v20, %v419_v62  ;;  %v546_v46 = vsel %vm530_vm13, 1, %v1258_v21 }
 0x110   : > { %v435_v44 = vadd.s32 %v434_v34, %v358_v30  ;;  %v547_v47 = vsel %vm531_vm14, 1, %v1258_v21  ;;  %v613_v48 = vadd.s32 %v612_v26, %v611_v7  ;;  %v618_v49 = vrot.slane %v617_v27, 1 }
 0x111   : > { %v629_v50 = vadd.s32 %v628_v29, %v627_v25  ;;  %v441_v51 = vadd.s32 %v440_v40, %v359_v33  ;;  %v632_v53 = vrot.slane %v546_v46, 4  ;;  %v638_v54 = vrot.slane %v547_v47, 4 }
 0x112   : > { %v436_v52 = vrot.slane %v435_v44, 2  ;;  %vm344_vm15 = vcmp.eq.s32.totalorder %v329_v42, %v1467_v17  ;;  %v426_v55 = vrot.slane %v425_v35, 1  ;;  %v432_v56 = vrot.slane %v431_v38, 1 }
 0x113   : > { %v624_v57 = vrot.slane %v623_v39, 1  ;;  %v442_v58 = vrot.slane %v441_v51, 2  ;;  %v633_v61 = vadd.s32 %v632_v53, %v546_v46  ;;  %v639_v62 = vadd.s32 %v638_v54, %v547_v47 }
 0x114   : > { %v437_v59 = vadd.s32 %v436_v52, %v435_v44  ;;  %vm345_vm0 = vcmp.eq.s32.totalorder %v329_v42, %v1469_v18  ;;  %v630_v0 = vrot.slane %v629_v50, 1  ;;  %v360_v4 = vsel %vm344_vm15, 1, %v1258_v21 }
 0x115   : > { %v443_v3 = vadd.s32 %v442_v58, %v441_v51  ;;  %v361_v5 = vsel %vm345_vm0, 1, %v1258_v21  ;;  %v634_v8 = vrot.slane %v633_v61, 2  ;;  %v640_v9 = vrot.slane %v639_v62, 2 }
 0x116   : > { %v438_v7 = vrot.slane %v437_v59, 1  ;;  %v446_v12 = vrot.slane %v360_v4, 4  ;;  %vm727_vm1 = vcmask 1042434   ;;  %v619_v17 = vadd.s32 %v618_v49, %v617_v27 }
 0x117   : > { %v427_v13 = vadd.s32 %v426_v55, %v425_v35  ;;  %v444_v14 = vrot.slane %v443_v3, 1  ;;  %v452_v19 = vrot.slane %v361_v5, 4  ;;  %vm729_vm3 = vcmask 1043459  }
 0x118   : > { %v433_v20 = vadd.s32 %v432_v56, %v431_v38  ;;  %v635_v1 = vadd.s32 %v634_v8, %v633_v61  ;;  %v641_v22 = vadd.s32 %v640_v9, %v639_v62  ;;  %v447_v18 = vadd.s32 %v446_v12, %v360_v4  ;;  %v660_v8 = vld [vmem:[#allocation2] sm:$0xff] }
 0x119   : > { %vm731_vm4 = vcmask 1044484   ;;  %v650_v23 = vadd.s32 %v1537_v2, %v1543_v10  ;;  %v625_v24 = vadd.s32 %v624_v57, %v623_v39  ;;  %v439_v21 = vadd.s32 %v438_v7, %v437_v59 }
 0x11a   : > { %v453_v25 = vadd.s32 %v452_v19, %v361_v5  ;;  %vm733_vm5 = vcmask 1045509   ;;  %v631_v26 = vadd.s32 %v630_v0, %v629_v50  ;;  %v445_v28 = vadd.s32 %v444_v14, %v443_v3 }
 0x11b   : > { %v636_v29 = vrot.slane %v635_v1, 1  ;;  %v448_v27 = vrot.slane %v447_v18, 2  ;;  %vm735_vm6 = vcmask 1046534   ;;  %v651_v30 = vadd.s32 %v1541_v6, %v1545_v11 }
 0x11c   : > { %v652_v33 = vadd.s32 %v1547_v15, %v415_v31  ;;  %v642_v34 = vrot.slane %v641_v22, 1  ;;  %v454_v35 = vrot.slane %v453_v25, 2  ;;  %v653_v38 = vadd.s32 %v1549_v16, %v421_v43 }
 0x11d   : > { %v654_v40 = vadd.s32 %v613_v48, %v427_v13  ;;  %v449_v2 = vadd.s32 %v448_v27, %v447_v18  ;;  %v655_v10 = vadd.s32 %v619_v17, %v433_v20  ;;  %v665_v39 = vcvt.s32.f32 %v1527_v37  ;;  %v824_v13 = vld [vmem:[%s1641_s1] sm:$0xff] (!%p954_p1) }
 0x11e   : > { %v666_v42 = vcvt.s32.f32 %v1529_v41  ;;  %v455_v44 = vadd.s32 %v454_v35, %v453_v25  ;;  %v656_v46 = vadd.s32 %v625_v24, %v439_v21  ;;  %v667_v47 = vcvt.s32.f32 %v650_v23 }
 0x11f   : > { %v637_v49 = vadd.s32 %v636_v29, %v635_v1  ;;  %v450_v50 = vrot.slane %v449_v2, 1  ;;  %v657_v51 = vadd.s32 %v631_v26, %v445_v28  ;;  %v668_v6 = vcvt.s32.f32 %v651_v30  ;;  %v955_v1 = vld [vmem:[%s1643_s3] ss:$0 sm:$0xff] (!%p954_p1) }
 0x120   : > { %v669_v11 = vcvt.s32.f32 %v652_v33  ;;  %v643_v15 = vadd.s32 %v642_v34, %v641_v22  ;;  %v456_v31 = vrot.slane %v455_v44, 1  ;;  %v670_v52 = vcvt.s32.f32 %v653_v38 }
 0x121   : > { %v671_v53 = vcvt.s32.f32 %v654_v40  ;;  %v451_v16 = vadd.s32 %v450_v50, %v449_v2  ;;  %v672_v43 = vcvt.s32.f32 %v655_v10  ;;  %v739_v37 = vsel %vm725_vm2, %v664_v32, %v662_v60 }
 0x122   : > { %v457_v48 = vadd.s32 %v456_v31, %v455_v44  ;;  %v673_v41 = vcvt.s32.f32 %v656_v46  ;;  %v728_v54 = vsel %vm727_vm1, %v665_v39, %v1525_v36  ;;  %v674_v55 = vcvt.s32.f32 %v657_v51 }
 0x123   : > { %v740_v56 = vsel %vm727_vm1, %v666_v42, %v739_v37  ;;  %v658_v57 = vadd.s32 %v637_v49, %v451_v16  ;;  %v730_v58 = vsel %vm729_vm3, %v667_v47, %v728_v54  ;;  %vm737_vm7 = vcmask 1047559  }
 0x124   : > { %v659_v59 = vadd.s32 %v643_v15, %v457_v48  ;;  %v741_v61 = vsel %vm729_vm3, %v668_v6, %v740_v56  ;;  %v732_v45 = vsel %vm731_vm4, %v669_v11, %v730_v58  ;;  %v1259_v14 = vmov (!%p954_p1), 0  }
 0x125   : > { %v742_v63 = vsel %vm731_vm4, %v670_v52, %v741_v61  ;;  %v675_v62 = vcvt.s32.f32 %v658_v57  ;;  %v734_v60 = vsel %vm733_vm5, %v671_v53, %v732_v45  ;;  %1106 = vset.pattern.permute.xlu0 (!%p954_p1), %v1259_v14  ;;  %1107 = vrcp.f32 (!%p954_p1), %v824_v13 }
 0x126   : > { %v676_v32 = vcvt.s32.f32 %v659_v59  ;;  %v743_v36 = vsel %vm733_vm5, %v672_v43, %v742_v63  ;;  %v736_v0 = vsel %vm735_vm6, %v673_v41, %v734_v60 }
 0x127   : > { %v744_v3 = vsel %vm735_vm6, %v674_v55, %v743_v36  ;;  %v738_v4 = vsel %vm737_vm7, %v675_v62, %v736_v0 }
 0x128   : > { %v745_v5 = vsel %vm737_vm7, %v676_v32, %v744_v3 }
 0x129   : > { %812 = vmatprep.mubr.f32.mxu0 %v745_v5 }
 0x12a   : > { %813 = vmatmul.mubr.f32.vlgmr.msra.gmra.mrb[0].mxu0 %v738_v4 }
 0x12f   : > { %v1108_v19 = vpop.eup (!%p954_p1), %1107 }
 0x130   : > { %829 = vperm.xlu0 (!%p954_p1), %1106, %v1108_v19  }
 0x1af   : > { %v830_v22 = vpop.permute.xlu0 (!%p954_p1), %829 }
 0x1fd   : > { %v993_v7 = vpop.f32.mrb[0].mxu0  ;;  %823 = sbr.rel (%p954_p1) target bundleno = 528 (0x210), region = 52 }
 0x1fe   : > { %v994_v9 = vpop.f32.mrb[1].mxu0 }
 0x1ff   : > { %v995_v12 = vadd.f32 %v994_v9, %v993_v7 }
 0x201   : > { %v818_v17 = vadd.f32 %v995_v12, %v660_v8 }
 0x203   : > { %819 = vst [vmem:[#allocation2] sm:$0xff] %v818_v17 }
 0x20a   : > { %v826_v20 = vld [vmem:[#allocation2] sm:$0xff] }
 0x20b   : > { %v832_v18 = vmul.f32 %v830_v22, %v826_v20 }
 0x20d   : > { %v840_v23 = vadd.f32 %v955_v1, %v832_v18 }
 0x20f   : > { %841 = vst [vmem:[#allocation8] sm:$0xff] %v840_v23 }
 0x210 PF: > { %p1596_p4 = scmp.eq.s32.totalorder %s941_s21, 3  ;;  %s1260_s26 = smov [#allocation8]  }
 0x211   : > { %s851_s9 = sshll.u32 %s1260_s26, 4  ;;  %s852_s9 = int_to_ptr.vmem [resolvable:$true] %s851_s9 }
 0x212   : > { %s1167_s13 = scalar_lea.vmem %s852_s9, 128  ;;  %p1174_p10 = scmp.lt.s32.totalorder %s852_s9, %s852_s9 }
 0x213   : > { %p1168_p5 = scmp.ne.s32.totalorder %s852_s9, %s1167_s13  ;;  %p1175_p11 = scmp.lt.s32.totalorder %s1167_s13, %s1167_s13 }
 0x215   : > { %p1169_p8 = pnand %p1168_p5, %p1596_p4  ;;  %p1176_p13 = por %p1175_p11, %p1174_p10 }
 0x217   : > { %p1170_p9 = pneg %p1169_p8 }
 0x219   : > { %p1177_p2 = pnand %p1176_p13, %p1170_p9 }
 0x21b   : > { %1180 = shalt.err (!%p1177_p2)
}
 0x21c   : > { %s1181_s21 = scalar_lea.hbm %s1644_s4, 128 }
 0x21d   : > { %p1182_p3 = scmp.ne.s32.totalorder %s1644_s4, %s1181_s21  ;;  %p1187_p6 = scmp.lt.u32.totalorder %s1181_s21, %s1644_s4 }
 0x21f   : > { %p1183_p12 = pnand %p1182_p3, %p1596_p4 }
 0x221   : > { %p1184_p0 = pneg %p1183_p12 }
 0x223   : > { %p1189_p7 = pnand %p1187_p6, %p1184_p0 }
 0x225   : > { %1192 = shalt.err (!%p1189_p7)
}
 0x226   : > { %1035 = dma.vmem_to_hbm [thread:$0]  (%p1596_p4), %s852_s9, 128, %s1644_s4, [#allocation5]  }
 0x227   : > { %1226 = dma.done.wait (%p1596_p4), [#allocation5], 128  }
 0x228   : > { %1228 = vsyncadd (%p1596_p4), [#allocation5], 4294967168 }
 0x229 PF: > { %s19_s20 = sadd.s32 1, %s1251_s20   ;;  %s1658_s15 = smov %s1235_s16 }
 0x22a   : > { %p16_p1 = scmp.ge.s32.totalorder %s19_s20, 6   ;;  %s1659_s16 = smov %s1239_s17 }
 0x22b   : > { %s1660_s17 = smov %s1374_s5  ;;  %s1661_s18 = smov %s1247_s19 }
 0x22c   : > { %s1662_s19 = smov %s1664_s28  ;;  %18 = sbr.rel (!%p16_p1) target bundleno = 6 (0x6), region = 92 }
 0x233   :  { %864 = vsyncpa [#allocation4], 1 }
 0x234   :  { %866 = vsyncpa [#allocation4 + $0x1], 1 }
 0x235   :  { %867 = vsyncpa [#allocation7], 1 }
 0x236   :  { %869 = vsyncpa [#allocation7 + $0x1], 1 }
 0x237   :  { %870 = vsyncpa [#allocation5], 1 }
 0x238   :  { %872 = vsyncpa [#allocation5 + $0x1], 1 }

</bundles_post_ra>
